<compile_context>
chip_gen: v6e
topology: v6e:2x2x1
jax: 0.10.0
libtpu: 0.0.40
codegen_flags: <defaults>
</compile_context>

<pallas_src>
import math
import numpy as np

import jax
import jax.numpy as jnp
from jax.experimental import pallas as pl
from jax.experimental.pallas import tpu as pltpu


# ---------------------------------------------------------------------------
# Exact numpy port of the reference anchor helpers (trace-time constants)
# ---------------------------------------------------------------------------
def _mkanchors(ws, hs, x_ctr, y_ctr):
    ws = ws[:, np.newaxis]
    hs = hs[:, np.newaxis]
    return np.hstack((x_ctr - 0.5 * (ws - 1), y_ctr - 0.5 * (hs - 1),
                      x_ctr + 0.5 * (ws - 1), y_ctr + 0.5 * (hs - 1)))


def _whctrs(anchor):
    w = anchor[2] - anchor[0] + 1
    h = anchor[3] - anchor[1] + 1
    return w, h, anchor[0] + 0.5 * (w - 1), anchor[1] + 0.5 * (h - 1)


def _ratio_enum(anchor, ratios):
    w, h, x_ctr, y_ctr = _whctrs(anchor)
    size = w * h
    size_ratios = size / ratios
    ws = np.round(np.sqrt(size_ratios))
    hs = np.round(ws * ratios)
    return _mkanchors(ws, hs, x_ctr, y_ctr)


def _scale_enum(anchor, scales):
    w, h, x_ctr, y_ctr = _whctrs(anchor)
    return _mkanchors(w * scales, h * scales, x_ctr, y_ctr)


def _generate_anchors(base_size, scales, aspect_ratios):
    anchor = np.array([1, 1, base_size, base_size], dtype=np.float64) - 0.5
    anchors = _ratio_enum(anchor, aspect_ratios)
    anchors = np.vstack([_scale_enum(anchors[i, :], scales)
                         for i in range(anchors.shape[0])])
    return anchors


def generate_cell_anchors(stride, sizes, aspect_ratios=(1.0,)):
    return _generate_anchors(
        stride,
        np.array(sizes, dtype=np.float64) / stride,
        np.array(aspect_ratios, dtype=np.float64)).astype(np.float32)


BBOX_XFORM_CLIP = math.log(1000.0 / 16)


def _round_up(x, m):
    return ((x + m - 1) // m) * m


def _choose_row_tile(n_locs, cap=1024):
    """Largest multiple-of-128 lane tile (<= cap) with bounded padding waste.

    cap stays at 1024 so the [Cf, rt] f32 SiLU intermediate does not blow the
    64-vreg register file (no inner sub-slice loop needed)."""
    rt = max(128, min(cap, _round_up(min(n_locs), 128)))
    while rt > 128:
        padded = [_round_up(n, rt) for n in n_locs]
        waste = (sum(padded) - sum(n_locs)) / float(sum(padded))
        if waste <= 0.10:
            break
        rt -= 128
    return rt


# ---------------------------------------------------------------------------
# Fused all-levels Pallas kernel (one grid step = one image x one lane tile)
#   layout: channels on sublanes, spatial locations on lanes (lane-dense).
#   lvl_ref : [T]          int32 SMEM  level index per tile (scalar prefetch)
#   x_ref   : [C,  rt]     bf16  pooled features for this image/tile
#   wbb_ref : [Cf, C]      bf16  backbone 1x1 conv weight of this tile's level
#   bbb_ref : [Cf, 1]      f32
#   wh_ref  : [ncls+5, Cf] bf16  fused head weight (cls | reg(4) | ctr(1))
#   bh_ref  : [ncls+5, 1]  f32
#   anch_ref: [4,  rt]     f32   per-location anchors (x1,y1,x2,y2 rows)
#   boxes_ref:[4,  rt]     f32   decoded boxes (one slab store)
#   rest_ref :[2*ncls+5, rt] bf16 scores(ncls)|cls(ncls)|reg(4)|ctr(1)
# ---------------------------------------------------------------------------
def _make_fused_kernel(ncls):
    def kernel(lvl_ref, x_ref, wbb_ref, bbb_ref, wh_ref, bh_ref, anch_ref,
               boxes_ref, rest_ref):
        del lvl_ref  # only consumed by the index_maps

        # backbone stand-in: 1x1 conv (bf16 MXU, f32 acc) + SiLU (f32 VPU/EUP)
        feat = jnp.dot(wbb_ref[...], x_ref[...],
                       preferred_element_type=jnp.float32) + bbb_ref[...]
        feat = feat * jax.nn.sigmoid(feat)                       # [Cf, rt]

        # shared head: single fused matmul for cls | box_regression | centerness
        head = jnp.dot(wh_ref[...], feat.astype(jnp.bfloat16),
                       preferred_element_type=jnp.float32) + bh_ref[...]
        cls = head[0:ncls, :]                                    # [ncls, rt]
        reg = head[ncls:ncls + 4, :]                             # [4,    rt]
        ctr = head[ncls + 4:ncls + 5, :]                         # [1,    rt]

        # BoxCoder.decode, regression_type == 'BOX' (TO_REMOVE = 1), vectorised
        # over the (x, y) row pair; anchor rows sliced straight from the Ref.
        a_lo = anch_ref[0:2, :]                                  # [x1; y1]
        a_hi = anch_ref[2:4, :]                                  # [x2; y2]
        wh = a_hi - a_lo + 1.0                                   # [w ; h ]
        ctr_xy = (a_hi + a_lo) * 0.5                             # [cx; cy]

        dxy = reg[0:2, :] / 10.0
        dwh = jnp.minimum(reg[2:4, :] / 5.0, BBOX_XFORM_CLIP)    # clamp pre-exp
        pred_ctr = dxy * wh + ctr_xy
        pred_wh = jnp.exp(dwh) * wh
        half = 0.5 * (pred_wh - 1.0)

        # coalesced slab stores (2 stores instead of 8 single-row stores)
        boxes_ref[...] = jnp.concatenate([pred_ctr - half, pred_ctr + half],
                                         axis=0)                 # [4, rt] f32

        # ATSS test-time score: sqrt(sigmoid(cls) * sigmoid(centerness))
        scores = jnp.sqrt(jax.nn.sigmoid(cls) * jax.nn.sigmoid(ctr))
        rest_ref[...] = jnp.concatenate([scores, head],
                                        axis=0).astype(jnp.bfloat16)

    return kernel


def run_fused_levels(lvl_tab, x_cat, wbb, bbb, wh_t, bh_t, anch_cat, ncls, rt):
    """x_cat: [B, C, Np] bf16 (all levels concatenated, each padded to rt);
       wbb: [nlev, Cf, C] bf16; anch_cat: [4, Np] f32; lvl_tab: [Np//rt] i32."""
    B, C, Np = x_cat.shape
    nlev, Cf, _ = wbb.shape
    NH = wh_t.shape[0]
    REST = ncls + NH
    T = Np // rt

    return pl.pallas_call(
        _make_fused_kernel(ncls),
        out_shape=(jax.ShapeDtypeStruct((B, 4, Np), jnp.float32),
                   jax.ShapeDtypeStruct((B, REST, Np), jnp.bfloat16)),
        grid_spec=pltpu.PrefetchScalarGridSpec(
            num_scalar_prefetch=1,
            grid=(B, T),
            in_specs=[
                pl.BlockSpec((None, C, rt), lambda b, t, lvl: (b, 0, t)),
                pl.BlockSpec((None, Cf, C), lambda b, t, lvl: (lvl[t], 0, 0)),
                pl.BlockSpec((None, Cf, 1), lambda b, t, lvl: (lvl[t], 0, 0)),
                pl.BlockSpec((NH, Cf), lambda b, t, lvl: (0, 0)),
                pl.BlockSpec((NH, 1), lambda b, t, lvl: (0, 0)),
                pl.BlockSpec((4, rt), lambda b, t, lvl: (0, t)),
            ],
            out_specs=[
                pl.BlockSpec((None, 4, rt), lambda b, t, lvl: (b, 0, t)),
                pl.BlockSpec((None, REST, rt), lambda b, t, lvl: (b, 0, t)),
            ]),
        compiler_params=pltpu.CompilerParams(
            dimension_semantics=("parallel", "parallel"),
            vmem_limit_bytes=16 * 1024 * 1024),
    )(lvl_tab, x_cat, wbb, bbb, wh_t, bh_t, anch_cat)


# ---------------------------------------------------------------------------
# Model wrapper (parameter setup, NCHW pooling, layout plumbing, one call)
# ---------------------------------------------------------------------------
class Config:
    prior = 0.01
    regression_type = 'BOX'
    n_class = 4
    anchor_sizes = (32, 64)
    anchor_strides = (8, 16)
    num_anchors = 1           # aspect_ratios=[1.0], scales_per_octave=1


class EfficientnetBifpnATSS:
    def __init__(self, key, config, in_channels, feat_channels=32):
        self.cfg = config
        self.cin = in_channels
        self.cf = feat_channels
        nlev = len(config.anchor_strides)
        keys = jax.random.split(key, 2 * nlev + 3)

        # stand-in backbone level: (avg-pool in wrapper) + 1x1 conv + SiLU.
        # weights stacked [nlev, Cf, C] (transposed, bf16) so the single
        # pallas_call can select the level's weights via scalar prefetch.
        bb_w = [(jax.random.normal(keys[2 * l], (in_channels, feat_channels),
                                   jnp.float32) * 0.05).T
                for l in range(nlev)]
        bb_b = [(jax.random.normal(keys[2 * l + 1], (1, feat_channels),
                                   jnp.float32) * 0.01).T
                for l in range(nlev)]
        self.bb_w = jnp.stack(bb_w, axis=0).astype(jnp.bfloat16)   # [nlev,Cf,C]
        self.bb_b = jnp.stack(bb_b, axis=0)                        # [nlev,Cf,1]

        # shared head (1x1 conv) fused into one [ncls+4+1, Cf] matmul;
        # cls bias initialised with the prior.
        A = config.num_anchors
        ncls = config.n_class
        bias_value = -math.log((1 - config.prior) / config.prior)
        wc = jax.random.normal(keys[-3], (feat_channels, A * ncls), jnp.float32) * 0.05
        wr = jax.random.normal(keys[-2], (feat_channels, A * 4), jnp.float32) * 0.05
        wt = jax.random.normal(keys[-1], (feat_channels, A * 1), jnp.float32) * 0.05
        self.head_w_t = jnp.concatenate([wc.T, wr.T, wt.T],
                                        axis=0).astype(jnp.bfloat16)
        self.head_b_t = jnp.concatenate(
            [jnp.full((A * ncls, 1), bias_value, jnp.float32),
             jnp.zeros((A * 4, 1), jnp.float32),
             jnp.zeros((A * 1, 1), jnp.float32)], axis=0)          # [ncls+5, 1]

        # exact cell anchors (aspect_ratios=[1.0], one octave => 1 per location)
        self.cell_anchors = [
            generate_cell_anchors(stride, (size,), (1.0,))
            for size, stride in zip(config.anchor_sizes, config.anchor_strides)]
        self._anchor_cache = {}

    # exact AnchorGenerator.grid_anchors + visibility, at trace time (numpy)
    def _level_anchors(self, l, hs, ws, stride, img_w, img_h):
        cache_key = (l, hs, ws, stride, img_w, img_h)
        if cache_key in self._anchor_cache:
            return self._anchor_cache[cache_key]
        sx = np.arange(0, ws * stride, stride, dtype=np.float32)
        sy = np.arange(0, hs * stride, stride, dtype=np.float32)
        shift_y, shift_x = np.meshgrid(sy, sx, indexing='ij')
        shift_x = shift_x.reshape(-1)
        shift_y = shift_y.reshape(-1)
        shifts = np.stack((shift_x, shift_y, shift_x, shift_y), axis=1)
        anchors = (shifts[:, None, :] +
                   self.cell_anchors[l][None, :, :]).reshape(-1, 4).astype(np.float32)
        # straddle_thresh = 0 visibility test
        vis = ((anchors[:, 0] >= 0.0) & (anchors[:, 1] >= 0.0)
               & (anchors[:, 2] < float(img_w))
               & (anchors[:, 3] < float(img_h))).astype(np.int32)[:, None]
        out = (anchors, vis)
        self._anchor_cache[cache_key] = out
        return out

    def __call__(self, images):
        """images: NCHW float32, inference path of Efficientnet_Bifpn_ATSS."""
        B, C, H, W = images.shape
        ncls = self.cfg.n_class
        strides = self.cfg.anchor_strides
        nlev = len(strides)

        # 1) Pool in NCHW directly (channels already on sublanes, locations on
        #    lanes after the flatten — no transposes). Coarser levels are
        #    derived from the previous level's pooled map, so the full-res
        #    image is read from HBM once.
        pooled = []
        prev, prev_stride = images, 1
        for stride in strides:
            if stride % prev_stride == 0:
                src, src_stride = prev, prev_stride
            else:
                src, src_stride = images, 1
            f = stride // src_stride
            hs, ws = src.shape[2] // f, src.shape[3] // f
            pm = src.reshape(B, C, hs, f, ws, f).mean(axis=(3, 5))  # [B,C,hs,ws]
            pooled.append(pm)
            prev, prev_stride = pm, stride

        # 2) Shared lane tile + per-level padding (only to a 128 multiple when
        #    levels are small — avoids the round-up-to-tile padding blow-up).
        n_locs = [(H // s) * (W // s) for s in strides]
        rt = _choose_row_tile(n_locs, cap=1024)
        padded = [_round_up(n, rt) for n in n_locs]
        offsets = [0]
        for p in padded[:-1]:
            offsets.append(offsets[-1] + p)
        np_cat = sum(padded)
        T = np_cat // rt

        x_cat = jnp.concatenate(
            [jnp.pad(pm.reshape(B, C, -1), ((0, 0), (0, 0), (0, p - n)))
             for pm, p, n in zip(pooled, padded, n_locs)],
            axis=-1).astype(jnp.bfloat16)                         # [B, C, Np]

        # 3) Anchors: trace-time numpy constants; lane-dense concatenated slab
        #    plus a per-tile level table (scalar prefetch for weight selection).
        anch_np = np.zeros((4, np_cat), np.float32)
        lvl_np = np.zeros((T,), np.int32)
        anchors_per_level, vis_per_level = [], []
        for l, stride in enumerate(strides):
            hs, ws = H // stride, W // stride
            anchors, vis = self._level_anchors(l, hs, ws, stride, W, H)
            anchors_per_level.append(anchors)
            vis_per_level.append(vis)
            off = offsets[l]
            anch_np[:, off:off + n_locs[l]] = anchors.T
            lvl_np[off // rt:(off + padded[l]) // rt] = l
        anch_cat = jnp.asarray(anch_np)
        lvl_tab = jnp.asarray(lvl_np)

        # 4) One fused pallas_call for all levels:
        #    backbone 1x1+SiLU -> fused head matmul -> score + BoxCoder decode.
        boxes_all, rest_all = run_fused_levels(
            lvl_tab, x_cat, self.bb_w, self.bb_b,
            self.head_w_t, self.head_b_t, anch_cat, ncls, rt)

        # 5) Split back per level: one transpose(+f32 convert) per output slab.
        outputs = []
        for l in range(nlev):
            off, n = offsets[l], n_locs[l]
            boxes = jnp.transpose(boxes_all[:, :, off:off + n], (0, 2, 1))
            rest = jnp.transpose(rest_all[:, :, off:off + n],
                                 (0, 2, 1)).astype(jnp.float32)
            outputs.append({
                'boxes': boxes,                                   # [B, n, 4]
                'scores': rest[..., 0:ncls],                      # [B, n, ncls]
                'anchors': jnp.asarray(anchors_per_level[l]),     # [n, 4]
                'visibility': jnp.asarray(vis_per_level[l]),      # [n, 1]
                'box_cls': rest[..., ncls:2 * ncls],              # [B, n, ncls]
                'box_regression': rest[..., 2 * ncls:2 * ncls + 4],
                'centerness': rest[..., 2 * ncls + 4:2 * ncls + 5],
            })

        # reference eval path returns (boxes, None)
        # TODO(synk): ATSSPostProcessor NMS / per-image top-k not implemented
        #             (no provided source, dynamic-shape sort/NMS).
        return outputs, None


# ---------------------------------------------------------------------------
if __name__ == "__main__":
    key = jax.random.PRNGKey(0)
    k_img, k_model = jax.random.split(key)

    cfg = Config()
    B, C, H, W = 2, 4, 32, 32
    images = jax.random.normal(k_img, (B, C, H, W), jnp.float32)

    model = EfficientnetBifpnATSS(k_model, cfg, in_channels=C, feat_channels=32)
    outputs, _ = model(images)

    for lvl in outputs:
        for v in lvl.values():
            jax.block_until_ready(v)

    print("KERNEL_OK")
</pallas_src>

<mosaic_0001>
module attributes {stable_mosaic.version = 11 : i64} {
  func.func @kernel(%arg0: i32, %arg1: i32, %arg2: memref<2xi32, #tpu.memory_space<smem>>, %arg3: memref<1x4x128xbf16, #tpu.memory_space<vmem>>, %arg4: memref<1x32x4xbf16, #tpu.memory_space<vmem>>, %arg5: memref<1x32x1xf32, #tpu.memory_space<vmem>>, %arg6: memref<9x32xbf16, #tpu.memory_space<vmem>>, %arg7: memref<9x1xf32, #tpu.memory_space<vmem>>, %arg8: memref<4x128xf32, #tpu.memory_space<vmem>>, %arg9: memref<1x4x128xf32, #tpu.memory_space<vmem>>, %arg10: memref<1x13x128xbf16, #tpu.memory_space<vmem>>) attributes {dimension_semantics = [#tpu.dimension_semantics<parallel>, #tpu.dimension_semantics<parallel>], iteration_bounds = array<i64: 2, 2>, scalar_prefetch = 1 : i64, scratch_operands = 0 : i64, tpu.core_type = #tpu.core_type<tc>, window_params = [{transform_indices = @transform_0, window_bounds = array<i64: 1, 4, 128>}, {transform_indices = @transform_1, window_bounds = array<i64: 1, 32, 4>}, {transform_indices = @transform_2, window_bounds = array<i64: 1, 32, 1>}, {pipeline_mode = #tpu.pipeline_mode<synchronous>, transform_indices = @transform_3, window_bounds = array<i64: 9, 32>}, {pipeline_mode = #tpu.pipeline_mode<synchronous>, transform_indices = @transform_4, window_bounds = array<i64: 9, 1>}, {transform_indices = @transform_5, window_bounds = array<i64: 4, 128>}, {transform_indices = @transform_6, window_bounds = array<i64: 1, 4, 128>}, {transform_indices = @transform_7, window_bounds = array<i64: 1, 13, 128>}]} {
    %c0 = arith.constant 0 : index
    %c0_0 = arith.constant 0 : index
    %c0_1 = arith.constant 0 : index
    %0 = vector.load %arg4[%c0, %c0_0, %c0_1] : memref<1x32x4xbf16, #tpu.memory_space<vmem>>, vector<1x32x4xbf16>
    %1 = vector.shape_cast %0 : vector<1x32x4xbf16> to vector<32x4xbf16>
    %c0_2 = arith.constant 0 : index
    %c0_3 = arith.constant 0 : index
    %c0_4 = arith.constant 0 : index
    %2 = vector.load %arg3[%c0_2, %c0_3, %c0_4] : memref<1x4x128xbf16, #tpu.memory_space<vmem>>, vector<1x4x128xbf16>
    %3 = vector.shape_cast %2 : vector<1x4x128xbf16> to vector<4x128xbf16>
    %cst = arith.constant dense<0.000000e+00> : vector<32x128xf32>
    %4 = tpu.matmul %1, %3, %cst {dimension_numbers = #tpu.dot_dimension_numbers<[1], [0], [0], [1], [0, 0, 1, 1], [], []>} : vector<32x4xbf16>, vector<4x128xbf16>, vector<32x128xf32> -> vector<32x128xf32>
    %c0_5 = arith.constant 0 : index
    %c0_6 = arith.constant 0 : index
    %c0_7 = arith.constant 0 : index
    %5 = vector.load %arg5[%c0_5, %c0_6, %c0_7] : memref<1x32x1xf32, #tpu.memory_space<vmem>>, vector<1x32x1xf32>
    %6 = vector.shape_cast %5 : vector<1x32x1xf32> to vector<32x1xf32>
    %7 = vector.broadcast %6 : vector<32x1xf32> to vector<32x128xf32>
    %8 = arith.addf %4, %7 : vector<32x128xf32>
    %9 = arith.negf %8 : vector<32x128xf32>
    %10 = math.exp %9 : vector<32x128xf32>
    %cst_8 = arith.constant 1.000000e+00 : f32
    %11 = vector.broadcast %cst_8 : f32 to vector<32x128xf32>
    %12 = arith.addf %11, %10 : vector<32x128xf32>
    %13 = arith.divf %11, %12 : vector<32x128xf32>
    %14 = arith.mulf %8, %13 : vector<32x128xf32>
    %c0_9 = arith.constant 0 : index
    %c0_10 = arith.constant 0 : index
    %15 = vector.load %arg6[%c0_9, %c0_10] : memref<9x32xbf16, #tpu.memory_space<vmem>>, vector<9x32xbf16>
    %16 = arith.truncf %14 : vector<32x128xf32> to vector<32x128xbf16>
    %cst_11 = arith.constant dense<0.000000e+00> : vector<9x128xf32>
    %17 = tpu.matmul %15, %16, %cst_11 {dimension_numbers = #tpu.dot_dimension_numbers<[1], [0], [0], [1], [0, 0, 1, 1], [], []>} : vector<9x32xbf16>, vector<32x128xbf16>, vector<9x128xf32> -> vector<9x128xf32>
    %c0_12 = arith.constant 0 : index
    %c0_13 = arith.constant 0 : index
    %18 = vector.load %arg7[%c0_12, %c0_13] : memref<9x1xf32, #tpu.memory_space<vmem>>, vector<9x1xf32>
    %19 = vector.broadcast %18 : vector<9x1xf32> to vector<9x128xf32>
    %20 = arith.addf %17, %19 : vector<9x128xf32>
    %21 = vector.extract_strided_slice %20 {offsets = [0, 0], sizes = [4, 128], strides = [1, 1]} : vector<9x128xf32> to vector<4x128xf32>
    %22 = vector.extract_strided_slice %20 {offsets = [4, 0], sizes = [4, 128], strides = [1, 1]} : vector<9x128xf32> to vector<4x128xf32>
    %23 = vector.extract_strided_slice %20 {offsets = [8, 0], sizes = [1, 128], strides = [1, 1]} : vector<9x128xf32> to vector<1x128xf32>
    %c0_14 = arith.constant 0 : index
    %c0_15 = arith.constant 0 : index
    %24 = vector.load %arg8[%c0_14, %c0_15] : memref<4x128xf32, #tpu.memory_space<vmem>>, vector<2x128xf32>
    %c2 = arith.constant 2 : index
    %c0_16 = arith.constant 0 : index
    %25 = vector.load %arg8[%c2, %c0_16] : memref<4x128xf32, #tpu.memory_space<vmem>>, vector<2x128xf32>
    %26 = arith.subf %25, %24 : vector<2x128xf32>
    %cst_17 = arith.constant 1.000000e+00 : f32
    %27 = vector.broadcast %cst_17 : f32 to vector<2x128xf32>
    %28 = arith.addf %26, %27 : vector<2x128xf32>
    %29 = arith.addf %25, %24 : vector<2x128xf32>
    %cst_18 = arith.constant 5.000000e-01 : f32
    %30 = vector.broadcast %cst_18 : f32 to vector<2x128xf32>
    %31 = arith.mulf %29, %30 : vector<2x128xf32>
    %32 = vector.extract_strided_slice %22 {offsets = [0, 0], sizes = [2, 128], strides = [1, 1]} : vector<4x128xf32> to vector<2x128xf32>
    %cst_19 = arith.constant 1.000000e+01 : f32
    %33 = vector.broadcast %cst_19 : f32 to vector<2x128xf32>
    %34 = arith.divf %32, %33 : vector<2x128xf32>
    %35 = vector.extract_strided_slice %22 {offsets = [2, 0], sizes = [2, 128], strides = [1, 1]} : vector<4x128xf32> to vector<2x128xf32>
    %cst_20 = arith.constant 5.000000e+00 : f32
    %36 = vector.broadcast %cst_20 : f32 to vector<2x128xf32>
    %37 = arith.divf %35, %36 : vector<2x128xf32>
    %cst_21 = arith.constant 4.13516665 : f32
    %38 = vector.broadcast %cst_21 : f32 to vector<2x128xf32>
    %39 = arith.minimumf %37, %38 : vector<2x128xf32>
    %40 = arith.mulf %34, %28 : vector<2x128xf32>
    %41 = arith.addf %40, %31 : vector<2x128xf32>
    %42 = math.exp %39 : vector<2x128xf32>
    %43 = arith.mulf %42, %28 : vector<2x128xf32>
    %cst_22 = arith.constant 1.000000e+00 : f32
    %44 = vector.broadcast %cst_22 : f32 to vector<2x128xf32>
    %45 = arith.subf %43, %44 : vector<2x128xf32>
    %cst_23 = arith.constant 5.000000e-01 : f32
    %46 = vector.broadcast %cst_23 : f32 to vector<2x128xf32>
    %47 = arith.mulf %46, %45 : vector<2x128xf32>
    %48 = arith.subf %41, %47 : vector<2x128xf32>
    %49 = arith.addf %41, %47 : vector<2x128xf32>
    %50 = tpu.concatenate %48, %49 in 0 : vector<2x128xf32>, vector<2x128xf32> -> vector<4x128xf32>
    %c0_24 = arith.constant 0 : index
    %c0_25 = arith.constant 0 : index
    %c0_26 = arith.constant 0 : index
    %51 = vector.load %arg9[%c0_24, %c0_25, %c0_26] : memref<1x4x128xf32, #tpu.memory_space<vmem>>, vector<1x4x128xf32>
    %52 = vector.shape_cast %51 : vector<1x4x128xf32> to vector<4x128xf32>
    %53 = vector.shape_cast %50 : vector<4x128xf32> to vector<1x4x128xf32>
    tpu.vector_store %arg9[%c0_24, %c0_25, %c0_26], %53 {strides = array<i32>} : memref<1x4x128xf32, #tpu.memory_space<vmem>>, vector<1x4x128xf32>,
    %54 = arith.negf %21 : vector<4x128xf32>
    %55 = math.exp %54 : vector<4x128xf32>
    %cst_27 = arith.constant 1.000000e+00 : f32
    %56 = vector.broadcast %cst_27 : f32 to vector<4x128xf32>
    %57 = arith.addf %56, %55 : vector<4x128xf32>
    %58 = arith.divf %56, %57 : vector<4x128xf32>
    %59 = arith.negf %23 : vector<1x128xf32>
    %60 = math.exp %59 : vector<1x128xf32>
    %cst_28 = arith.constant 1.000000e+00 : f32
    %61 = vector.broadcast %cst_28 : f32 to vector<1x128xf32>
    %62 = arith.addf %61, %60 : vector<1x128xf32>
    %63 = arith.divf %61, %62 : vector<1x128xf32>
    %64 = vector.broadcast %63 : vector<1x128xf32> to vector<4x128xf32>
    %65 = arith.mulf %58, %64 : vector<4x128xf32>
    %66 = math.sqrt %65 : vector<4x128xf32>
    %67 = tpu.concatenate %66, %20 in 0 : vector<4x128xf32>, vector<9x128xf32> -> vector<13x128xf32>
    %68 = arith.truncf %67 : vector<13x128xf32> to vector<13x128xbf16>
    %c0_29 = arith.constant 0 : index
    %c0_30 = arith.constant 0 : index
    %c0_31 = arith.constant 0 : index
    %69 = vector.load %arg10[%c0_29, %c0_30, %c0_31] : memref<1x13x128xbf16, #tpu.memory_space<vmem>>, vector<1x13x128xbf16>
    %70 = vector.shape_cast %69 : vector<1x13x128xbf16> to vector<13x128xbf16>
    %71 = vector.shape_cast %68 : vector<13x128xbf16> to vector<1x13x128xbf16>
    tpu.vector_store %arg10[%c0_29, %c0_30, %c0_31], %71 {strides = array<i32>} : memref<1x13x128xbf16, #tpu.memory_space<vmem>>, vector<1x13x128xbf16>,
    return
  }
  func.func @transform_0(%arg0: i32, %arg1: i32, %arg2: memref<2xi32, #tpu.memory_space<smem>>) -> (i32, i32, i32) {
    %c0_i32 = arith.constant 0 : i32
    %c0_i32_0 = arith.constant 0 : i32
    return %arg0, %c0_i32, %arg1 : i32, i32, i32
  }
  func.func @transform_1(%arg0: i32, %arg1: i32, %arg2: memref<2xi32, #tpu.memory_space<smem>>) -> (i32, i32, i32) {
    %0 = arith.index_cast %arg1 : i32 to index
    %1 = memref.load %arg2[%0] : memref<2xi32, #tpu.memory_space<smem>>
    %c0_i32 = arith.constant 0 : i32
    %c0_i32_0 = arith.constant 0 : i32
    %c0_i32_1 = arith.constant 0 : i32
    return %1, %c0_i32, %c0_i32_0 : i32, i32, i32
  }
  func.func @transform_2(%arg0: i32, %arg1: i32, %arg2: memref<2xi32, #tpu.memory_space<smem>>) -> (i32, i32, i32) {
    %0 = arith.index_cast %arg1 : i32 to index
    %1 = memref.load %arg2[%0] : memref<2xi32, #tpu.memory_space<smem>>
    %c0_i32 = arith.constant 0 : i32
    %c0_i32_0 = arith.constant 0 : i32
    %c0_i32_1 = arith.constant 0 : i32
    return %1, %c0_i32, %c0_i32_0 : i32, i32, i32
  }
  func.func @transform_3(%arg0: i32, %arg1: i32, %arg2: memref<2xi32, #tpu.memory_space<smem>>) -> (i32, i32) {
    %c0_i32 = arith.constant 0 : i32
    %c0_i32_0 = arith.constant 0 : i32
    %c0_i32_1 = arith.constant 0 : i32
    return %c0_i32, %c0_i32_0 : i32, i32
  }
  func.func @transform_4(%arg0: i32, %arg1: i32, %arg2: memref<2xi32, #tpu.memory_space<smem>>) -> (i32, i32) {
    %c0_i32 = arith.constant 0 : i32
    %c0_i32_0 = arith.constant 0 : i32
    %c0_i32_1 = arith.constant 0 : i32
    return %c0_i32, %c0_i32_0 : i32, i32
  }
  func.func @transform_5(%arg0: i32, %arg1: i32, %arg2: memref<2xi32, #tpu.memory_space<smem>>) -> (i32, i32) {
    %c0_i32 = arith.constant 0 : i32
    %c0_i32_0 = arith.constant 0 : i32
    return %c0_i32, %arg1 : i32, i32
  }
  func.func @transform_6(%arg0: i32, %arg1: i32, %arg2: memref<2xi32, #tpu.memory_space<smem>>) -> (i32, i32, i32) {
    %c0_i32 = arith.constant 0 : i32
    %c0_i32_0 = arith.constant 0 : i32
    return %arg0, %c0_i32, %arg1 : i32, i32, i32
  }
  func.func @transform_7(%arg0: i32, %arg1: i32, %arg2: memref<2xi32, #tpu.memory_space<smem>>) -> (i32, i32, i32) {
    %c0_i32 = arith.constant 0 : i32
    %c0_i32_0 = arith.constant 0 : i32
    return %arg0, %c0_i32, %arg1 : i32, i32, i32
  }
}

</mosaic_0001>

<bundles_post_ra>
// kernel: tpu_custom_call.1
= control target key start
LH: loop header
LB: loop body
LE: loop exit
PB: predicated region body
PF: predicated region fallthrough
CT: control target
= control target key end

     0   :  { %s1411_s0 = inlined_call_operand.vmem [shape: s32[2], index: 0, kind: input, shape index: {}]   ;;  %s1412_s1 = inlined_call_operand.vmem [shape: bf16[2,4,256], index: 1, kind: input, shape index: {}]   ;;  %s1413_s2 = inlined_call_operand.vmem [shape: bf16[2,32,4], index: 2, kind: input, shape index: {}]   ;;  %s1414_s3 = inlined_call_operand.vmem [shape: f32[2,32,1], index: 3, kind: input, shape index: {}]   ;;  %s1415_s4 = inlined_call_operand.vmem [shape: bf16[9,32], index: 4, kind: input, shape index: {}]   ;;  %s1416_s5 = inlined_call_operand.vmem [shape: f32[9,1], index: 5, kind: input, shape index: {}]   ;;  %s1417_s6 = inlined_call_operand.vmem [shape: f32[4,256], index: 6, kind: input, shape index: {}]   ;;  %s1418_s7 = inlined_call_operand.hbm [shape: f32[2,4,256], index: 7, kind: output, shape index: {0}]   ;;  %s1419_s8 = inlined_call_operand.vmem [shape: bf16[2,13,256], index: 8, kind: output, shape index: {1}]  }
   0x1   :  { %1422 = sst [smem:[#allocation11_spill]] %s1412_s1  ;;  %s14_s29 = sshll.u32 %s1411_s0, 4  ;;  %s15_s29 = int_to_ptr.vmem [resolvable:$true] %s14_s29 }
   0x2   :  { %s1056_s30 = scalar_lea.vmem %s15_s29, 16  ;;  %p1061_p1 = scmp.lt.s32.totalorder %s15_s29, %s15_s29 }
   0x3   :  { %p1057_p0 = scmp.ne.s32.totalorder %s15_s29, %s1056_s30  ;;  %p1062_p2 = scmp.lt.s32.totalorder %s1056_s30, %s1056_s30 }
   0x5   :  { %p1063_p3 = por %p1062_p2, %p1061_p1 }
   0x7   :  { %p1064_p4 = pnand %p1063_p3, %p1057_p0 }
   0x9   :  { %1067 = shalt.err (!%p1064_p4)  }
   0xa   :  { %s1164_s9 = smov [#allocation3]  }
   0xb   :  { %17 = dma.vmem_to_smem %s15_s29, 16, %s1164_s9, [#allocation2] }
   0xc   :  { %1126 = dma.done.wait [#allocation2], 16 }
   0xd   :  { %1127 = vsyncadd [#allocation2], 4294967280 }
   0xe   :  { %19 = sfence }
   0xf   :  { %20 = vsyncpa [#allocation5], 0 }
  0x10   :  { %22 = vsyncpa [#allocation5 + $0x1], 0  ;;  %s1217_s10 = smov 0   ;;  %s1219_s11 = smov 0  }
  0x11   :  { %s1221_s0 = smov 0   ;;  %s1223_s12 = smov 0  }
  0x12   :  { %s1225_s13 = smov 0   ;;  %s1227_s14 = smov 0  }
  0x13   :  { %s1229_s15 = smov 0   ;;  %s1231_s16 = smov 0  }
  0x14 LB: > { %s886_s17 = sadd.s32 4294967295, %s1162_s16   ;;  %s887_s18 = sadd.s32 4294967294, %s1162_s16   ;;  %s1162_s16 = sphi %s1231_s16, %s28_s16   ;;  %s1158_s15 = sphi %s1229_s15, %s1436_s15   ;;  %s1154_s14 = sphi %s1227_s14, %s1435_s14   ;;  %s1150_s13 = sphi %s1225_s13, %s1434_s13   ;;  %s1146_s12 = sphi %s1223_s12, %s1433_s12   ;;  %s1142_s0 = sphi %s1221_s0, %s1432_s0   ;;  %s1138_s11 = sphi %s1219_s11, %s1431_s11   ;;  %s1134_s10 = sphi %s1217_s10, %s1430_s10  }
  0x15   : > { %s37_s19 = sadd.s32 1, %s1154_s14  ;;  %s40_s20 = sadd.s32 1, %s1158_s15 }
  0x16   : > { %p38_p5 = scmp.ge.s32.totalorder %s37_s19, 2  ;;  %p211_p6 = scmp.ne.s32.totalorder %s1142_s0, %s1138_s11 }
  0x17   : > { %p212_p7 = scmp.eq.s32.totalorder %s886_s17, 3  ;;  %p217_p10 = scmp.ne.s32.totalorder %s1138_s11, %s1134_s10 }
  0x18   : > { %s1438_s19 = smov (%p38_p5, %s37_s19), 0  ;;  %s1440_s20 = smov (!%p38_p5, %s40_s20), %s1158_s15 }
  0x19   : > { %1423 = sst [smem:[#allocation9_spill]] %s1438_s19  ;;  %s197_s21 = ssub.s32 %s1154_s14, %s1438_s19 }
  0x1a   : > { %p1268_p8 = por %p212_p7, %p211_p6  ;;  %p42_p9 = scmp.ge.s32.totalorder %s1440_s20, 2 }
  0x1b   : > { %p218_p11 = scmp.eq.s32.totalorder %s887_s18, 3  ;;  %p890_p12 = scmp.ge.s32.totalorder %s1162_s16, 1 }
  0x1c   : > { %s1442_s20 = smov (%p42_p9, %s1440_s20), 0  ;;  %p308_p0 = scmp.lt.s32.totalorder %s1162_s16, 5 }
  0x1d   : > { %1425 = sst [smem:[#allocation10_spill]] %s1442_s20  ;;  %p1277_p13 = por %p218_p11, %p217_p10 }
  0x1e   : > { %s196_s24 = ssub.s32 %s1158_s15, %s1442_s20  ;;  %s201_s25 = sadd.s32 1, %s1142_s0 }
  0x1f   : > { %s198_s26 = sor.u32 %s197_s21, %s196_s24  ;;  %p309_p1 = pnand %p890_p12, %p308_p0 }
  0x20   : > { %p199_p2 = scmp.eq.s32.totalorder %s198_s26, 0  ;;  %p363_p3 = scmp.lt.s32.totalorder (!%p309_p1), %s1150_s13, 1 }
  0x21   : > { %312 = sbr.rel (%p309_p1) target bundleno = 566 (0x236), region = 44  ;;  %p365_p4 = scmp.lt.s32.totalorder (!%p309_p1), %s1146_s12, 1 }
  0x22   : > { %s1286_s27 = scalar_select %p199_p2, %s1142_s0, %s201_s25  }
  0x23   : > { %s371_s28 = sld [smem:[#allocation3 + %s1146_s12]] (!%p309_p1) }
  0x24   : > { %s378_s17 = sld [smem:[#allocation3 + %s1146_s12]] (!%p309_p1) }
  0x25   : > { %s1427_s1 = sld [smem:[#allocation11_spill]] (!%p309_p1) }
  0x26   : > { %v1165_v0 = vmov 0   ;;  %s364_s29 = scalar_select %p363_p3, %s1150_s13, 1  ;;  %vm436_vm0 = vcmask 1041408   ;;  %vm429_vm1 = vcmask 31744   ;;  %v522_v9 = vld [vmem:[%s1416_s5 + $0x8] sm:$0x1] }
  0x27   : > { %1023 = vset.pattern.permute.xlu0 %v1165_v0  ;;  %1024 = vset.pattern.permute.xlu1 %v1165_v0  ;;  %s1293_s30 = scalar_select %p365_p4, %s1146_s12, 1  ;;  %v521_v10 = vld [vmem:[%s1416_s5] sm:$0xff]  ;;  %v1166_v11 = vmov 0.0   ;;  %vm1167_vm2 = vmmov 0   ;;  %vm538_vm3 = vcmask 261120   ;;  %vm648_vm4 = vcmask 1043456  }
  0x28   : > { %s893_s9 = sshll.u32 %s364_s29, 1  ;;  %939 = vmatprep.subr.bf16.mxu1 %v1166_v11  ;;  %943 = vmatprep.mubr.msk.bf16.mxu1 %vm1167_vm2, %v1166_v11  ;;  %v1027_v46 = vld [vmem:[%s1415_s4] sm:$0x1f]   ;;  %vm664_vm5 = vcmask 1042432   ;;  %vm665_vm6 = vsmask.f32 2304 }
  0x29   : > { %s368_s18 = sadd.s32 %s893_s9, %s1293_s30  ;;  %p372_p5 = scmp.lt.s32.totalorder %s371_s28, 1  ;;  %vm666_vm7 = vmand %vm664_vm5, %vm665_vm6 }
  0x2a   : > { %s894_s21 = sshll.u32 %s368_s18, 1  ;;  %p379_p6 = scmp.lt.s32.totalorder %s378_s17, 1 }
  0x2b   : > { %s370_s26 = scalar_lea.vmem %s1427_s1, %s894_s21  ;;  %s1444_s28 = smov (!%p372_p5, %s371_s28), 1 }
  0x2c   : > { %v394_v1 = vld [vmem:[%s370_s26] sm:$0x3]  ;;  %s923_s20 = sshll.u32 %s1444_s28, 4  ;;  %s1446_s17 = smov (!%p379_p6, %s378_s17), 1 }
  0x2d   : > { %947 = vmatprep.subr.msk.bf16.mxu0 %vm436_vm0, %v394_v1  ;;  %v438_v2 = vsel %vm436_vm0, %v394_v1, 0  ;;  %s376_s9 = scalar_lea.vmem %s1413_s2, %s923_s20  ;;  %s924_s18 = sshll.u32 %s1446_s17, 5 }
  0x2e   : > { %934 = vmatpush3.bf16.msra.mxu0 %v438_v2  ;;  %v1025_v3 = vld [vmem:[%s376_s9] sm:$0xff]   ;;  %v1026_v4 = vld [vmem:[%s376_s9 + $0x8] sm:$0xff]   ;;  %s383_s25 = scalar_lea.vmem %s1414_s3, %s924_s18  ;;  %s1318_s9 = sand.u32 1, %s1138_s11  }
  0x2f   : > { %935 = vmatprep.mubr.msk.bf16.mxu0 %vm429_vm1, %v1025_v3  ;;  %v397_v5 = vld [vmem:[%s383_s25 + $0x10] sm:$0xff]  ;;  %v395_v6 = vld [vmem:[%s383_s25] sm:$0xff]  ;;  %v398_v7 = vld [vmem:[%s383_s25 + $0x18] sm:$0xff]  ;;  %s892_s18 = sshll.u32 %s1318_s9, 3  ;;  %s899_s21 = sshll.u32 %s1293_s30, 2 }
  0x30   : > { %411 = vperm.xlu0 %1023, %v397_v5   ;;  %401 = vperm.xlu1 %1024, %v395_v6   ;;  %v396_v8 = vld [vmem:[%s383_s25 + $0x8] sm:$0xff]  ;;  %s388_s19 = scalar_lea.vmem %s1417_s6, %s899_s21  ;;  %s1333_s30 = scalar_lea.vmem [#allocation6], %s892_s18 }
  0x31   : > { %936 = vmatmul.mubr.msk.bf16.vlgmr.msra.gmra.mxu0 %vm429_vm1, %v1026_v4  ;;  %v667_v63 = vld [vmem:[%s1333_s30 + $0x4] sm:$0x7]  ;;  %v583_v0 = vld [vmem:[%s388_s19] sm:$0x3]  ;;  %v584_v1 = vld [vmem:[%s388_s19 + $0x2] sm:$0x3] }
  0x32   : > { %v585_v4 = vsub.f32 %v584_v1, %v583_v0  ;;  %v587_v6 = vadd.f32 %v584_v1, %v583_v0  ;;  %s917_s20 = sshll.u32 %s1150_s13, 1  ;;  %s891_s28 = sshll.u32 %s1318_s9, 2 }
  0x33   : > { %s686_s26 = sadd.s32 %s1146_s12, %s917_s20  ;;  %s356_s29 = scalar_lea.vmem [#allocation4], %s891_s28 }
  0x34   : > { %416 = vperm.xlu0 %1023, %v398_v7   ;;  %406 = vperm.xlu1 %1024, %v396_v8   ;;  %v586_v5 = vadd.f32 1.0, %v585_v4  ;;  %s918_s17 = sshll.u32 %s686_s26, 6  ;;  %s690_s18 = sshll.u32 %s356_s29, 4  ;;  %s1346_s18 = int_to_ptr.vmem [resolvable:$true] %s690_s18 }
  0x35   : > { %s1344_s25 = scalar_lea.hbm %s1418_s7, %s918_s17  ;;  %s671_s19 = scalar_lea.sflag [#allocation5], %s1318_s9 }
  0x36   : > { %v604_v7 = vrot.slane %v586_v5, 2  ;;  %s1068_s20 = scalar_lea.vmem %s1346_s18, 64  ;;  %s1168_s28 = smov [#allocation4]  }
  0x37   : > { %p1069_p7 = scmp.ne.s32.totalorder %s1346_s18, %s1068_s20  ;;  %s1072_s26 = sshll.u32 %s1168_s28, 4  ;;  %s1073_s26 = int_to_ptr.vmem [resolvable:$false] %s1072_s26 }
  0x38   : > { %530 = vperm.xlu0 %1023, %v522_v9   ;;  %525 = vperm.xlu1 %1024, %v521_v10   ;;  %v588_v9 = vmul.f32 0.5, %v587_v6  ;;  %v595_v10 = vrot.slane %v586_v5, 4  ;;  %s1074_s17 = scalar_lea.vmem %s1073_s26, 128  ;;  %p1075_p11 = scmp.lt.s32.totalorder %s1346_s18, %s1073_s26 }
  0x39   : > { %p1070_p9 = pnand %p1069_p7, %p1268_p8  ;;  %p1076_p12 = scmp.lt.s32.totalorder %s1074_s17, %s1068_s20 }
  0x3b   : > { %p1071_p10 = pneg %p1070_p9  ;;  %p1077_p0 = por %p1076_p12, %p1075_p11 }
  0x3d   : > { %p1078_p1 = pnand %p1077_p0, %p1071_p10 }
  0xab   : > { %v412_v12 = vpop.permute.xlu0 %411  ;;  %v402_v13 = vpop.permute.xlu1 %401 }
  0xaf   : > { %v417_v19 = vpop.permute.xlu0 %416  ;;  %v407_v23 = vpop.permute.xlu1 %406 }
  0xb3   : > { %v526_v47 = vpop.permute.xlu1 %525  ;;  %v531_v52 = vpop.permute.xlu0 %530 }
  0xf1   : > { %v937_v14 = vpop.f32.mrf.mxu0 }
  0xf2   : > { %v483_v15 = vadd.f32 %v937_v14, %v412_v12 }
  0xf3   : > { %v474_v16 = vpop.f32.mrf.mxu0 }
  0xf4   : > { %v906_v17 = vmul.f32 -1.442695, %v483_v15  ;;  %v475_v18 = vadd.f32 %v474_v16, %v402_v13 }
  0xf5   : > { %v938_v20 = vpop.f32.mrf.mxu0 }
  0xf6   : > { %1028 = vpow2.f32 %v906_v17  ;;  %v904_v21 = vmul.f32 -1.442695, %v475_v18  ;;  %v486_v22 = vadd.f32 %v938_v20, %v417_v19  ;;  %v599_v17 = vrot.slane %v588_v9, 4 }
  0xf7   : > { %v477_v24 = vpop.f32.mrf.mxu0 }
  0xf8   : > { %1030 = vpow2.f32 %v904_v21  ;;  %v907_v25 = vmul.f32 -1.442695, %v486_v22  ;;  %v478_v26 = vadd.f32 %v477_v24, %v407_v23  ;;  %v634_v21 = vlaneseq }
  0xfa   : > { %1032 = vpow2.f32 %v907_v25  ;;  %v905_v27 = vmul.f32 -1.442695, %v478_v26 }
  0xfc   : > { %1034 = vpow2.f32 %v905_v27 }
 0x103   : > { %v1029_v28 = vpop.eup %1028 }
 0x104   : > { %v503_v29 = vadd.f32 1.0, %v1029_v28 }
 0x105   : > { %v1031_v30 = vpop.eup %1030 }
 0x106   : > { %v501_v32 = vadd.f32 1.0, %v1031_v30  ;;  %1036 = vrcp.f32 %v503_v29 }
 0x107   : > { %v1033_v31 = vpop.eup %1032 }
 0x108   : > { %v504_v33 = vadd.f32 1.0, %v1033_v31 }
 0x109   : > { %v1035_v34 = vpop.eup %1034 }
 0x10a   : > { %1038 = vrcp.f32 %v504_v33  ;;  %v502_v35 = vadd.f32 1.0, %v1035_v34 }
 0x10b   : > { %1040 = vrcp.f32 %v501_v32 }
 0x10c   : > { %1042 = vrcp.f32 %v502_v35 }
 0x113   : > { %v1037_v36 = vpop.eup %1036 }
 0x114   : > { %v515_v39 = vmul.f32 %v1037_v36, %v483_v15 }
 0x117   : > { %v1039_v37 = vpop.eup %1038 }
 0x118   : > { %v1041_v38 = vpop.eup %1040  ;;  %v516_v40 = vmul.f32 %v1039_v37, %v486_v22 }
 0x119   : > { %v1043_v41 = vpop.eup %1042  ;;  %v513_v44 = vmul.f32 %v1041_v38, %v475_v18 }
 0x11a   : > { %v514_v42 = vmul.f32 %v1043_v41, %v478_v26  ;;  %v520_v43 = vpack.c.bf16 %v516_v40, %v515_v39  ;;  %v635_v26 = vshrl.u32 %v634_v21, 7 }
 0x11c   : > { %940 = vmatpush3.bf16.msra.mxu1 %v520_v43  ;;  %v519_v45 = vpack.c.bf16 %v514_v42, %v513_v44  ;;  %v636_v30 = vsub.s32 0, %v635_v26 }
 0x11d   : > { %941 = vmatprep.subr.bf16.mxu1 %v1166_v11 }
 0x120   : > { %942 = vmatpush3.bf16.msra.mxu1 %v519_v45 }
 0x123   : > { %944 = vmatmul.mubr.msk.bf16.vlgmr.msra.gmra.mxu1 %vm538_vm3, %v1027_v46 }
 0x1e3   : > { %v576_v48 = vpop.f32.mrf.mxu1 }
 0x1e4   : > { %v1320_v49 = vadd.f32 %v576_v48, %v526_v47 }
 0x1e5   : > { %v945_v50 = vpop.f32.mrf.mxu1 }
 0x1e6   : > { %v592_v51 = vmul.f32 0.2, %v1320_v49  ;;  %v911_v53 = vmul.f32 -1.442695, %v1320_v49  ;;  %v649_v59 = vrot.slane %v1320_v49, 4 }
 0x1e7   : > { %v579_v54 = vpop.f32.mrf.mxu1  ;;  %v590_v11 = vmul.f32 0.1, %v1320_v49 }
 0x1e8   : > { %v593_v55 = vmin.f32 %v592_v51, 4.1351666  ;;  %v580_v56 = vadd.f32 %v579_v54, %v531_v52  ;;  %1044 = vpow2.f32 %v911_v53 }
 0x1e9   : > { %v946_v57 = vpop.f32.mrf.mxu1  ;;  %v597_v18 = vmul.f32 %v595_v10, %v590_v11 }
 0x1ea   : > { %v602_v58 = vmul.f32 1.442695, %v593_v55  ;;  %v912_v60 = vmul.f32 -1.442695, %v580_v56  ;;  %v650_v61 = vrot.slane %v580_v56, 4 }
 0x1eb   : > { %v601_v22 = vadd.f32 %v599_v17, %v597_v18 }
 0x1ec   : > { %1046 = vpow2.f32 %v602_v58  ;;  %v651_v62 = vsel %vm648_vm4, %v649_v59, %v650_v61 }
 0x1ed   : > { %1048 = vpow2.f32 %v912_v60  ;;  %v926_v2 = vpack.c.bf16 %v651_v62, %v651_v62 }
 0x1ef   : > { %v668_v3 = vsel %vm666_vm7, %v926_v2, %v667_v63 }
 0x1f0   : > { %669 = vst [vmem:[%s1333_s30 + $0x4] sm:$0x7] %v668_v3 }
 0x1f5   : > { %v1045_v8 = vpop.eup %1044 }
 0x1f6   : > { %v625_v15 = vadd.f32 1.0, %v1045_v8 }
 0x1f9   : > { %v1047_v12 = vpop.eup %1046 }
 0x1fa   : > { %v1049_v13 = vpop.eup %1048  ;;  %v606_v14 = vmul.f32 %v1047_v12, %v604_v7 }
 0x1fb   : > { %v631_v16 = vadd.f32 1.0, %v1049_v13 }
 0x1fc   : > { %v910_v19 = vadd.f32 -1.0, %v606_v14 }
 0x1fd   : > { %1050 = vrcp.f32 %v631_v16 }
 0x1fe   : > { %v608_v20 = vmul.f32 0.5, %v910_v19  ;;  %1052 = vrcp.f32 %v625_v15 }
 0x200   : > { %v610_v23 = vrot.slane %v608_v20, 2 }
 0x202   : > { %v612_v24 = vsub.f32 %v601_v22, %v610_v23  ;;  %v613_v25 = vadd.f32 %v610_v23, %v601_v22 }
 0x204   : > { %v615_v27 = vrot.slane %v612_v24, 4  ;;  %v618_v28 = vrot.slane %v613_v25, 2 }
 0x206   : > { %v620_v29 = vsel %vm436_vm0, %v615_v27, %v618_v28 }
 0x207   : > { %621 = vst [vmem:[%s356_s29] sm:$0xf] %v620_v29 }
 0x208   : > { %1081 = shalt.err (!%p1078_p1)
}
 0x209   : > { %s1082_s29 = scalar_lea.hbm %s1344_s25, 64  ;;  %s1086_s24 = scalar_lea.hbm %s1418_s7, 256 }
 0x20a   : > { %p1083_p2 = scmp.ne.s32.totalorder %s1344_s25, %s1082_s29  ;;  %p1087_p5 = scmp.lt.s32.totalorder %s1344_s25, %s1418_s7 }
 0x20b   : > { %p1088_p6 = scmp.lt.s32.totalorder %s1086_s24, %s1082_s29 }
 0x20c   : > { %p1084_p3 = pnand %p1083_p2, %p1268_p8 }
 0x20d   : > { %p1089_p7 = por %p1088_p6, %p1087_p5 }
 0x20e   : > { %p1085_p4 = pneg %p1084_p3 }
 0x210   : > { %p1090_p9 = pnand %p1089_p7, %p1085_p4 }
 0x212   : > { %1093 = shalt.err (!%p1090_p9)
}
 0x213   : > { %948 = dma.vmem_to_hbm [thread:$0]  (%p1268_p8), %s1346_s18, 64, %s1344_s25, %s671_s19   ;;  %v1051_v31 = vpop.eup %1050  ;;  %v719_v43 = vld [vmem:[%s1333_s30 + $0x4] sm:$0xf] (%p1268_p8) }
 0x214   : > { %v637_v32 = vrot.slane %v1051_v31, %v636_v30  ;;  %v1053_v33 = vpop.eup %1052  ;;  %s919_s1 = sshll.u32 (%p1268_p8), %s1150_s13, 2 }
 0x215   : > { %s698_s18 = sadd.s32 (%p1268_p8), %s1146_s12, %s919_s1 }
 0x216   : > { %v638_v34 = vmul.f32 %v1053_v33, %v637_v32  ;;  %s920_s25 = sshll.u32 (%p1268_p8), %s698_s18, 2 }
 0x217   : > { %s700_s26 = scalar_lea.vmem (%p1268_p8), %s1419_s8, %s920_s25 }
 0x218   : > { %1054 = vrsqrt.f32 %v638_v34  ;;  %vm641_vm8 = vcmp.eq.f32.partialorder %v638_v34, inf  ;;  %v644_v37 = vand.u32 2147483648, %v638_v34  ;;  %vm643_vm9 = vcmp.eq.f32.partialorder %v638_v34, 0.0  ;;  %720 = vst [vmem:[%s700_s26 + $0x8] sm:$0xf] (%p1268_p8), %v719_v43 }
 0x225   : > { %v1055_v35 = vpop.eup %1054 }
 0x226   : > { %v640_v36 = vmul.f32 %v1055_v35, %v638_v34 }
 0x228   : > { %v642_v38 = vsel %vm641_vm8, %v638_v34, %v640_v36 }
 0x229   : > { %v645_v39 = vsel %vm643_vm9, %v644_v37, %v642_v38  ;;  %696 = sbr.rel (!%p1268_p8) target bundleno = 566 (0x236), region = 52 }
 0x22a   : > { %v654_v40 = vsel %vm648_vm4, %v645_v39, %v649_v59 }
 0x22b   : > { %v925_v41 = vpack.c.bf16 %v654_v40, %v654_v40 }
 0x22d   : > { %663 = vst [vmem:[%s1333_s30] sm:$0xf] %v925_v41 }
 0x234   : > { %v717_v42 = vld [vmem:[%s1333_s30] sm:$0xf] }
 0x235   : > { %718 = vst [vmem:[%s700_s26] sm:$0xf] %v717_v42 }
 0x236 PF: > { %p954_p8 = scmp.ge.s32.totalorder %s1162_s16, 2  ;;  %s754_s22 = sand.u32 1, %s1134_s10  }
 0x237   : > { %s755_s12 = scalar_lea.sflag [#allocation5], %s754_s22 }
 0x238   : > { %p951_p10 = pnand %p954_p8, %p1277_p13 }
 0x23a   : > { %p952_p11 = pneg %p951_p10 }
 0x23c   : > { %1129 = dma.done.wait (%p952_p11), %s755_s12, 64  }
 0x23d   : > { %1131 = vsyncadd (%p952_p11), %s755_s12, 4294967232  ;;  %s28_s16 = sadd.s32 1, %s1162_s16   ;;  %s1428_s30 = sld [smem:[#allocation9_spill]] }
 0x23e   : > { %p25_p12 = scmp.ge.s32.totalorder %s28_s16, 6   ;;  %s1429_s17 = sld [smem:[#allocation10_spill]] }
 0x23f   : > { %s1430_s10 = smov %s1138_s11  ;;  %s1431_s11 = smov %s1142_s0 }
 0x240   : > { %s1432_s0 = smov %s1286_s27  ;;  %s1433_s12 = smov %s1154_s14 }
 0x241   : > { %s1434_s13 = smov %s1158_s15  ;;  %27 = sbr.rel (!%p25_p12) target bundleno = 20 (0x14), region = 141 }
 0x243   : > { %s1435_s14 = smov %s1428_s30 }
 0x244   : > { %s1436_s15 = smov %s1429_s17 }
 0x246   :  { %767 = vsyncpa [#allocation5], 1 }
 0x247   :  { %769 = vsyncpa [#allocation5 + $0x1], 1 }

</bundles_post_ra>
